<compile_context>
chip_gen: v7x
topology: tpu7x:2x2x1
jax: 0.10.0
libtpu: 0.0.40
codegen_flags: <defaults>
</compile_context>

<pallas_src>
import jax
import jax.numpy as jnp
from jax.experimental import pallas as pl
from jax.experimental.pallas import tpu as pltpu

# ---- resnet18 stem config ----
C_IN, C_OUT = 3, 64
KH = KW = 7
CONV_STRIDE, CONV_PAD = 2, 3
BN_EPS = 1e-5

K_FEAT = KH * KW * C_IN       # 147
K2 = 2 * K_FEAT               # 294 (two im2col rows side by side)
N_OUT2 = 2 * C_OUT            # 128 -> lane-dense output width
MAX_ROW_BLK = 2048            # paired rows per conv grid step (= 4096 im2col rows)


def _conv_bn_relu_kernel(p_ref, w_ref, shift_ref, o_ref):
    """Paired-row im2col matmul (bf16 in, f32 acc) + folded-BN shift + ReLU, bf16 store."""
    acc = jnp.dot(p_ref[...], w_ref[...], preferred_element_type=jnp.float32)
    o_ref[...] = jnp.maximum(acc + shift_ref[...], 0.0).astype(o_ref.dtype)


def _maxpool_kernel(a_ref, b_ref, c_ref, d_ref, ch_ref, dh_ref, o_ref):
    """3x3/s2/pad1 max pool on 2x2 phase blocks of the post-ReLU conv output.

    a/b/c/d = (even,even)/(even,odd)/(odd,even)/(odd,odd) (row,col) phases for this block of
    output rows; ch/dh = the single odd-row phase row just above the block (halo).
    Zero-fill stands in for -inf padding because all values are post-ReLU >= 0.
    """
    t = o_ref.shape[0]

    def shift_w(x):  # x[.., pw, :] -> x[.., pw-1, :], zero at pw == 0
        z = jnp.zeros_like(x[:, :1, :])
        return jnp.concatenate([z, x[:, :-1, :]], axis=1)

    a, b, c, d = a_ref[...], b_ref[...], c_ref[...], d_ref[...]
    row_e = jnp.maximum(jnp.maximum(a, b), shift_w(b))        # even input row 2*ph
    row_o = jnp.maximum(jnp.maximum(c, d), shift_w(d))        # odd  input row 2*ph+1
    ch, dh = ch_ref[...], dh_ref[...]
    halo = jnp.maximum(jnp.maximum(ch, dh), shift_w(dh))      # odd input row 2*ph-1 at block top
    halo = jnp.where(pl.program_id(0) == 0, jnp.zeros_like(halo), halo)
    row_o_prev = jnp.concatenate([halo, row_o[:-1]], axis=0) if t > 1 else halo
    o_ref[...] = jnp.maximum(jnp.maximum(row_e, row_o), row_o_prev)


def _conv_pallas(patches3, w_big, shift2, r_blk):
    """(n_phase, p_rows, 294) paired im2col rows -> (n_phase, p_rows, 128) bf16."""
    n_ph, p_rows, k2 = patches3.shape
    return pl.pallas_call(
        _conv_bn_relu_kernel,
        out_shape=jax.ShapeDtypeStruct((n_ph, p_rows, N_OUT2), jnp.bfloat16),
        grid=(n_ph, p_rows // r_blk),
        in_specs=[
            pl.BlockSpec((None, r_blk, k2), lambda p, g: (p, g, 0)),
            pl.BlockSpec((k2, N_OUT2), lambda p, g: (0, 0)),
            pl.BlockSpec((1, N_OUT2), lambda p, g: (0, 0)),
        ],
        out_specs=pl.BlockSpec((None, r_blk, N_OUT2), lambda p, g: (p, g, 0)),
        compiler_params=pltpu.CompilerParams(
            dimension_semantics=("parallel", "parallel")),
    )(patches3, w_big, shift2)


def _pool_pallas(conv_ph, ph, pw, nc):
    """conv_ph: (4, PH, PW, NC) phase layout (bf16) -> pooled (PH, PW, NC) bf16."""
    lane = 128 if nc % 128 == 0 else nc       # 128 cap keeps the 4-phase working set VMEM-safe
    n_lane = nc // lane
    if ph % 4 == 0 and ph >= 16:
        n_h = 4
    elif ph % 2 == 0 and ph >= 4:
        n_h = 2
    else:
        n_h = 1
    t = ph // n_h

    def phase_spec(p):
        return pl.BlockSpec((None, t, pw, lane), lambda i, j, p=p: (p, i, 0, j))

    def halo_spec(p):         # one odd-row-phase row just above this output-row block
        return pl.BlockSpec((None, 1, pw, lane),
                            lambda i, j, p=p: (p, jnp.maximum(i * t - 1, 0), 0, j))

    return pl.pallas_call(
        _maxpool_kernel,
        out_shape=jax.ShapeDtypeStruct((ph, pw, nc), jnp.bfloat16),
        grid=(n_h, n_lane),
        in_specs=[phase_spec(0), phase_spec(1), phase_spec(2), phase_spec(3),
                  halo_spec(2), halo_spec(3)],
        out_specs=pl.BlockSpec((t, pw, lane), lambda i, j: (i, 0, j)),
        compiler_params=pltpu.CompilerParams(
            dimension_semantics=("parallel", "parallel")),
    )(conv_ph, conv_ph, conv_ph, conv_ph, conv_ph, conv_ph)


def resnet_branch0_map(x_nchw, params):
    w = params["conv_w"].astype(jnp.float32)
    gamma, beta = params["gamma"], params["beta"]
    rmean, rvar = params["mean"], params["var"]

    N, _, H, W = x_nchw.shape
    OH = (H + 2 * CONV_PAD - KH) // CONV_STRIDE + 1
    OW = (W + 2 * CONV_PAD - KW) // CONV_STRIDE + 1
    NC = N * C_OUT

    # ---- fold BN (eval, running stats) into weights / shift; block-diagonal weights ----
    inv_std = jax.lax.rsqrt(rvar + BN_EPS)
    scale = gamma * inv_std                                   # (64,)
    shift = beta - rmean * scale                              # (64,)
    w_mat = jnp.transpose(w, (2, 3, 1, 0)).reshape(K_FEAT, C_OUT) * scale[None, :]
    zeros = jnp.zeros_like(w_mat)
    w_big = jnp.concatenate(
        [jnp.concatenate([w_mat, zeros], axis=1),
         jnp.concatenate([zeros, w_mat], axis=1)], axis=0).astype(jnp.bfloat16)   # (294, 128)
    shift2 = jnp.concatenate([shift, shift]).reshape(1, N_OUT2).astype(jnp.float32)

    # ---- input: bf16 first, then a cheap transpose to (H, W, N, C) + spatial zero pad ----
    x_hwnc = jnp.transpose(x_nchw.astype(jnp.bfloat16), (2, 3, 0, 1))
    xp = jnp.pad(x_hwnc, ((CONV_PAD,) * 2, (CONV_PAD,) * 2, (0, 0), (0, 0)))

    OH2, OW2 = OH // 2, OW // 2
    fast = (OH % 2 == 0) and (OW % 2 == 0) and ((OH2 * OW2 * N) % 2 == 0)
    if fast:
        p_rows = (OH2 * OW2 * N) // 2
        r_blk = p_rows
        for cand in range(min(p_rows, MAX_ROW_BLK), 7, -1):
            if p_rows % cand == 0 and cand % 8 == 0:
                r_blk = cand
                break
        fast = r_blk <= 4 * MAX_ROW_BLK        # give up if no VMEM-sized divisor exists

    if fast:
        # im2col rows ordered (oh%2, ow%2, oh//2, ow//2, n): the conv output is then already
        # the 2x2 phase layout the pool wants -- no intervening XLA pass, no [:M] slice.
        slabs = []
        for hp in (0, 1):
            for wp in (0, 1):
                cols = []
                for kh in range(KH):
                    for kw in range(KW):
                        cols.append(xp[2 * hp + kh: 2 * hp + kh + 4 * OH2: 4,
                                       2 * wp + kw: 2 * wp + kw + 4 * OW2: 4])
                slabs.append(jnp.stack(cols, axis=3).reshape(OH2 * OW2 * N, K_FEAT))
        patches = jnp.stack(slabs, axis=0).reshape(4, p_rows, K2)       # (4, p_rows, 294) bf16

        conv = _conv_pallas(patches, w_big, shift2, r_blk)              # (4, p_rows, 128) bf16
        conv_ph = conv.reshape(4, OH2, OW2, NC)                         # free reshape
        PH, PW = OH2, OW2
    else:
        # Rare fallback (odd conv-output extent): plain (oh, ow, n) row order, then one small
        # XLA pass zero-pads to even extents and reorders into the phase layout.
        M = OH * OW * N
        cols = []
        for kh in range(KH):
            for kw in range(KW):
                cols.append(xp[kh: kh + 2 * OH: 2, kw: kw + 2 * OW: 2])
        patches = jnp.stack(cols, axis=3).reshape(M, K_FEAT)
        half = (M + 1) // 2
        r_blk = MAX_ROW_BLK if half >= MAX_ROW_BLK else ((half + 7) // 8) * 8
        p_rows = ((half + r_blk - 1) // r_blk) * r_blk
        patches = jnp.pad(patches, ((0, 2 * p_rows - M), (0, 0))).reshape(1, p_rows, K2)
        conv = _conv_pallas(patches, w_big, shift2, r_blk)              # (1, p_rows, 128)
        y = conv.reshape(2 * p_rows, C_OUT)[:M].reshape(OH, OW, NC)
        OHe, OWe = OH + OH % 2, OW + OW % 2
        y = jnp.pad(y, ((0, OHe - OH), (0, OWe - OW), (0, 0)))          # zero pad == -inf post-ReLU
        conv_ph = jnp.transpose(y.reshape(OHe // 2, 2, OWe // 2, 2, NC),
                                (1, 3, 0, 2, 4)).reshape(4, OHe // 2, OWe // 2, NC)
        PH, PW = OHe // 2, OWe // 2

    pooled = _pool_pallas(conv_ph, PH, PW, NC)                          # (PH, PW, NC) bf16
    out = pooled.reshape(PH, PW, N, C_OUT)
    return jnp.transpose(out, (2, 3, 0, 1)).astype(jnp.float32)         # back to NCHW, f32


def reference(x, params):
    """Pure-JAX reference for correctness check."""
    conv = jax.lax.conv_general_dilated(
        x, params["conv_w"], window_strides=(2, 2), padding=((3, 3), (3, 3)),
        dimension_numbers=("NCHW", "OIHW", "NCHW"),
        precision=jax.lax.Precision.HIGHEST)
    inv_std = jax.lax.rsqrt(params["var"] + BN_EPS)
    scale = (params["gamma"] * inv_std)[None, :, None, None]
    shift = (params["beta"] - params["mean"] * params["gamma"] * inv_std)[None, :, None, None]
    y = jnp.maximum(conv * scale + shift, 0.0)
    return jax.lax.reduce_window(
        y, -jnp.inf, jax.lax.max,
        window_dimensions=(1, 1, 3, 3), window_strides=(1, 1, 2, 2),
        padding=((0, 0), (0, 0), (1, 1), (1, 1)))


if __name__ == "__main__":
    # Deterministic synthetic parameters (pretrained checkpoint not loaded).
    key = jax.random.PRNGKey(0)
    kx, kw_, kg, kb, km, kv = jax.random.split(key, 6)
    x = jax.random.normal(kx, (2, C_IN, 32, 32), jnp.float32)
    params = dict(
        conv_w=jax.random.normal(kw_, (C_OUT, C_IN, KH, KW), jnp.float32) * 0.05,
        gamma=1.0 + 0.1 * jax.random.normal(kg, (C_OUT,), jnp.float32),
        beta=0.1 * jax.random.normal(kb, (C_OUT,), jnp.float32),
        mean=0.1 * jax.random.normal(km, (C_OUT,), jnp.float32),
        var=jax.random.uniform(kv, (C_OUT,), jnp.float32, minval=0.5, maxval=1.5),
    )

    out = jax.jit(resnet_branch0_map)(x, params)
    out = jax.block_until_ready(out)

    ref = reference(x, params)
    assert out.shape == (2, C_OUT, 8, 8), out.shape
    max_err = float(jnp.max(jnp.abs(out - ref)))
    assert jnp.allclose(out, ref, atol=2e-2, rtol=2e-2), max_err
    print("KERNEL_OK")
</pallas_src>

<mosaic_0001>
module attributes {stable_mosaic.version = 11 : i64} {
  func.func @_conv_bn_relu_kernel(%arg0: i32, %arg1: i32, %arg2: memref<1x64x294xbf16, #tpu.memory_space<vmem>>, %arg3: memref<294x128xbf16, #tpu.memory_space<vmem>>, %arg4: memref<1x128xf32, #tpu.memory_space<vmem>>, %arg5: memref<1x64x128xbf16, #tpu.memory_space<vmem>>) attributes {dimension_semantics = [#tpu.dimension_semantics<parallel>, #tpu.dimension_semantics<parallel>], iteration_bounds = array<i64: 4, 1>, scalar_prefetch = 0 : i64, scratch_operands = 0 : i64, tpu.core_type = #tpu.core_type<tc>, window_params = [{transform_indices = @transform_0, window_bounds = array<i64: 1, 64, 294>}, {pipeline_mode = #tpu.pipeline_mode<synchronous>, transform_indices = @transform_1, window_bounds = array<i64: 294, 128>}, {pipeline_mode = #tpu.pipeline_mode<synchronous>, transform_indices = @transform_2, window_bounds = array<i64: 1, 128>}, {transform_indices = @transform_3, window_bounds = array<i64: 1, 64, 128>}]} {
    %c0 = arith.constant 0 : index
    %c0_0 = arith.constant 0 : index
    %c0_1 = arith.constant 0 : index
    %0 = vector.load %arg2[%c0, %c0_0, %c0_1] : memref<1x64x294xbf16, #tpu.memory_space<vmem>>, vector<1x64x294xbf16>
    %1 = vector.shape_cast %0 : vector<1x64x294xbf16> to vector<64x294xbf16>
    %c0_2 = arith.constant 0 : index
    %c0_3 = arith.constant 0 : index
    %2 = vector.load %arg3[%c0_2, %c0_3] : memref<294x128xbf16, #tpu.memory_space<vmem>>, vector<294x128xbf16>
    %cst = arith.constant dense<0.000000e+00> : vector<64x128xf32>
    %3 = tpu.matmul %1, %2, %cst {dimension_numbers = #tpu.dot_dimension_numbers<[1], [0], [0], [1], [0, 0, 1, 1], [], []>} : vector<64x294xbf16>, vector<294x128xbf16>, vector<64x128xf32> -> vector<64x128xf32>
    %c0_4 = arith.constant 0 : index
    %c0_5 = arith.constant 0 : index
    %4 = vector.load %arg4[%c0_4, %c0_5] : memref<1x128xf32, #tpu.memory_space<vmem>>, vector<1x128xf32>
    %5 = vector.broadcast %4 : vector<1x128xf32> to vector<64x128xf32>
    %6 = arith.addf %3, %5 : vector<64x128xf32>
    %cst_6 = arith.constant 0.000000e+00 : f32
    %7 = vector.broadcast %cst_6 : f32 to vector<64x128xf32>
    %8 = arith.maximumf %6, %7 : vector<64x128xf32>
    %9 = arith.truncf %8 : vector<64x128xf32> to vector<64x128xbf16>
    %c0_7 = arith.constant 0 : index
    %c0_8 = arith.constant 0 : index
    %c0_9 = arith.constant 0 : index
    %10 = vector.load %arg5[%c0_7, %c0_8, %c0_9] : memref<1x64x128xbf16, #tpu.memory_space<vmem>>, vector<1x64x128xbf16>
    %11 = vector.shape_cast %10 : vector<1x64x128xbf16> to vector<64x128xbf16>
    %12 = vector.shape_cast %9 : vector<64x128xbf16> to vector<1x64x128xbf16>
    tpu.vector_store %arg5[%c0_7, %c0_8, %c0_9], %12 {strides = array<i32>} : memref<1x64x128xbf16, #tpu.memory_space<vmem>>, vector<1x64x128xbf16>,
    return
  }
  func.func @transform_0(%arg0: i32, %arg1: i32) -> (i32, i32, i32) {
    %c0_i32 = arith.constant 0 : i32
    %c0_i32_0 = arith.constant 0 : i32
    return %arg0, %arg1, %c0_i32 : i32, i32, i32
  }
  func.func @transform_1(%arg0: i32, %arg1: i32) -> (i32, i32) {
    %c0_i32 = arith.constant 0 : i32
    %c0_i32_0 = arith.constant 0 : i32
    %c0_i32_1 = arith.constant 0 : i32
    return %c0_i32, %c0_i32_0 : i32, i32
  }
  func.func @transform_2(%arg0: i32, %arg1: i32) -> (i32, i32) {
    %c0_i32 = arith.constant 0 : i32
    %c0_i32_0 = arith.constant 0 : i32
    %c0_i32_1 = arith.constant 0 : i32
    return %c0_i32, %c0_i32_0 : i32, i32
  }
  func.func @transform_3(%arg0: i32, %arg1: i32) -> (i32, i32, i32) {
    %c0_i32 = arith.constant 0 : i32
    %c0_i32_0 = arith.constant 0 : i32
    return %arg0, %arg1, %c0_i32 : i32, i32, i32
  }
}

module attributes {stable_mosaic.version = 11 : i64} {
  func.func @_maxpool_kernel(%arg0: i32, %arg1: i32, %arg2: memref<1x4x8x128xbf16, #tpu.memory_space<vmem>>, %arg3: memref<1x4x8x128xbf16, #tpu.memory_space<vmem>>, %arg4: memref<1x4x8x128xbf16, #tpu.memory_space<vmem>>, %arg5: memref<1x4x8x128xbf16, #tpu.memory_space<vmem>>, %arg6: memref<1x1x8x128xbf16, #tpu.memory_space<vmem>>, %arg7: memref<1x1x8x128xbf16, #tpu.memory_space<vmem>>, %arg8: memref<4x8x128xbf16, #tpu.memory_space<vmem>>) attributes {dimension_semantics = [#tpu.dimension_semantics<parallel>, #tpu.dimension_semantics<parallel>], iteration_bounds = array<i64: 2, 1>, scalar_prefetch = 0 : i64, scratch_operands = 0 : i64, tpu.core_type = #tpu.core_type<tc>, window_params = [{transform_indices = @transform_0, window_bounds = array<i64: 1, 4, 8, 128>}, {transform_indices = @transform_1, window_bounds = array<i64: 1, 4, 8, 128>}, {transform_indices = @transform_2, window_bounds = array<i64: 1, 4, 8, 128>}, {transform_indices = @transform_3, window_bounds = array<i64: 1, 4, 8, 128>}, {transform_indices = @transform_4, window_bounds = array<i64: 1, 1, 8, 128>}, {transform_indices = @transform_5, window_bounds = array<i64: 1, 1, 8, 128>}, {transform_indices = @transform_6, window_bounds = array<i64: 4, 8, 128>}]} {
    %c0 = arith.constant 0 : index
    %c0_0 = arith.constant 0 : index
    %c0_1 = arith.constant 0 : index
    %c0_2 = arith.constant 0 : index
    %0 = vector.load %arg2[%c0, %c0_0, %c0_1, %c0_2] : memref<1x4x8x128xbf16, #tpu.memory_space<vmem>>, vector<1x4x8x128xbf16>
    %1 = vector.shape_cast %0 : vector<1x4x8x128xbf16> to vector<4x8x128xbf16>
    %c0_3 = arith.constant 0 : index
    %c0_4 = arith.constant 0 : index
    %c0_5 = arith.constant 0 : index
    %c0_6 = arith.constant 0 : index
    %2 = vector.load %arg3[%c0_3, %c0_4, %c0_5, %c0_6] : memref<1x4x8x128xbf16, #tpu.memory_space<vmem>>, vector<1x4x8x128xbf16>
    %3 = vector.shape_cast %2 : vector<1x4x8x128xbf16> to vector<4x8x128xbf16>
    %c0_7 = arith.constant 0 : index
    %c0_8 = arith.constant 0 : index
    %c0_9 = arith.constant 0 : index
    %c0_10 = arith.constant 0 : index
    %4 = vector.load %arg4[%c0_7, %c0_8, %c0_9, %c0_10] : memref<1x4x8x128xbf16, #tpu.memory_space<vmem>>, vector<1x4x8x128xbf16>
    %5 = vector.shape_cast %4 : vector<1x4x8x128xbf16> to vector<4x8x128xbf16>
    %c0_11 = arith.constant 0 : index
    %c0_12 = arith.constant 0 : index
    %c0_13 = arith.constant 0 : index
    %c0_14 = arith.constant 0 : index
    %6 = vector.load %arg5[%c0_11, %c0_12, %c0_13, %c0_14] : memref<1x4x8x128xbf16, #tpu.memory_space<vmem>>, vector<1x4x8x128xbf16>
    %7 = vector.shape_cast %6 : vector<1x4x8x128xbf16> to vector<4x8x128xbf16>
    %8 = arith.maximumf %1, %3 : vector<4x8x128xbf16>
    %cst = arith.constant 0.000000e+00 : bf16
    %9 = vector.broadcast %cst : bf16 to vector<4x1x128xbf16>
    %10 = vector.extract_strided_slice %3 {offsets = [0, 0, 0], sizes = [4, 7, 128], strides = [1, 1, 1]} : vector<4x8x128xbf16> to vector<4x7x128xbf16>
    %11 = tpu.concatenate %9, %10 in 1 : vector<4x1x128xbf16>, vector<4x7x128xbf16> -> vector<4x8x128xbf16>
    %12 = arith.maximumf %8, %11 : vector<4x8x128xbf16>
    %13 = arith.maximumf %5, %7 : vector<4x8x128xbf16>
    %cst_15 = arith.constant 0.000000e+00 : bf16
    %14 = vector.broadcast %cst_15 : bf16 to vector<4x1x128xbf16>
    %15 = vector.extract_strided_slice %7 {offsets = [0, 0, 0], sizes = [4, 7, 128], strides = [1, 1, 1]} : vector<4x8x128xbf16> to vector<4x7x128xbf16>
    %16 = tpu.concatenate %14, %15 in 1 : vector<4x1x128xbf16>, vector<4x7x128xbf16> -> vector<4x8x128xbf16>
    %17 = arith.maximumf %13, %16 : vector<4x8x128xbf16>
    %c0_16 = arith.constant 0 : index
    %c0_17 = arith.constant 0 : index
    %c0_18 = arith.constant 0 : index
    %c0_19 = arith.constant 0 : index
    %18 = vector.load %arg6[%c0_16, %c0_17, %c0_18, %c0_19] : memref<1x1x8x128xbf16, #tpu.memory_space<vmem>>, vector<1x1x8x128xbf16>
    %19 = vector.shape_cast %18 : vector<1x1x8x128xbf16> to vector<1x8x128xbf16>
    %c0_20 = arith.constant 0 : index
    %c0_21 = arith.constant 0 : index
    %c0_22 = arith.constant 0 : index
    %c0_23 = arith.constant 0 : index
    %20 = vector.load %arg7[%c0_20, %c0_21, %c0_22, %c0_23] : memref<1x1x8x128xbf16, #tpu.memory_space<vmem>>, vector<1x1x8x128xbf16>
    %21 = vector.shape_cast %20 : vector<1x1x8x128xbf16> to vector<1x8x128xbf16>
    %22 = arith.maximumf %19, %21 : vector<1x8x128xbf16>
    %cst_24 = arith.constant 0.000000e+00 : bf16
    %23 = vector.broadcast %cst_24 : bf16 to vector<1x1x128xbf16>
    %24 = vector.extract_strided_slice %21 {offsets = [0, 0, 0], sizes = [1, 7, 128], strides = [1, 1, 1]} : vector<1x8x128xbf16> to vector<1x7x128xbf16>
    %25 = tpu.concatenate %23, %24 in 1 : vector<1x1x128xbf16>, vector<1x7x128xbf16> -> vector<1x8x128xbf16>
    %26 = arith.maximumf %22, %25 : vector<1x8x128xbf16>
    %c0_i32 = arith.constant 0 : i32
    %27 = arith.cmpi eq, %arg0, %c0_i32 : i32
    %cst_25 = arith.constant 0.000000e+00 : bf16
    %28 = vector.broadcast %cst_25 : bf16 to vector<1x8x128xbf16>
    %29 = arith.select %27, %28, %26 : vector<1x8x128xbf16>
    %30 = vector.extract_strided_slice %17 {offsets = [0, 0, 0], sizes = [3, 8, 128], strides = [1, 1, 1]} : vector<4x8x128xbf16> to vector<3x8x128xbf16>
    %31 = tpu.concatenate %29, %30 in 0 : vector<1x8x128xbf16>, vector<3x8x128xbf16> -> vector<4x8x128xbf16>
    %32 = arith.maximumf %12, %17 : vector<4x8x128xbf16>
    %33 = arith.maximumf %32, %31 : vector<4x8x128xbf16>
    %c0_26 = arith.constant 0 : index
    %c0_27 = arith.constant 0 : index
    %c0_28 = arith.constant 0 : index
    %34 = vector.load %arg8[%c0_26, %c0_27, %c0_28] : memref<4x8x128xbf16, #tpu.memory_space<vmem>>, vector<4x8x128xbf16>
    tpu.vector_store %arg8[%c0_26, %c0_27, %c0_28], %33 {strides = array<i32>} : memref<4x8x128xbf16, #tpu.memory_space<vmem>>, vector<4x8x128xbf16>,
    return
  }
  func.func @transform_0(%arg0: i32, %arg1: i32) -> (i32, i32, i32, i32) {
    %c0_i32 = arith.constant 0 : i32
    %c0_i32_0 = arith.constant 0 : i32
    %c0_i32_1 = arith.constant 0 : i32
    return %c0_i32, %arg0, %c0_i32_0, %arg1 : i32, i32, i32, i32
  }
  func.func @transform_1(%arg0: i32, %arg1: i32) -> (i32, i32, i32, i32) {
    %c1_i32 = arith.constant 1 : i32
    %c0_i32 = arith.constant 0 : i32
    %c0_i32_0 = arith.constant 0 : i32
    return %c1_i32, %arg0, %c0_i32, %arg1 : i32, i32, i32, i32
  }
  func.func @transform_2(%arg0: i32, %arg1: i32) -> (i32, i32, i32, i32) {
    %c2_i32 = arith.constant 2 : i32
    %c0_i32 = arith.constant 0 : i32
    %c0_i32_0 = arith.constant 0 : i32
    return %c2_i32, %arg0, %c0_i32, %arg1 : i32, i32, i32, i32
  }
  func.func @transform_3(%arg0: i32, %arg1: i32) -> (i32, i32, i32, i32) {
    %c3_i32 = arith.constant 3 : i32
    %c0_i32 = arith.constant 0 : i32
    %c0_i32_0 = arith.constant 0 : i32
    return %c3_i32, %arg0, %c0_i32, %arg1 : i32, i32, i32, i32
  }
  func.func @transform_4(%arg0: i32, %arg1: i32) -> (i32, i32, i32, i32) {
    %c4_i32 = arith.constant 4 : i32
    %0 = arith.muli %arg0, %c4_i32 : i32
    %c1_i32 = arith.constant 1 : i32
    %1 = arith.subi %0, %c1_i32 : i32
    %c0_i32 = arith.constant 0 : i32
    %2 = arith.maxsi %1, %c0_i32 : i32
    %c2_i32 = arith.constant 2 : i32
    %c0_i32_0 = arith.constant 0 : i32
    %c0_i32_1 = arith.constant 0 : i32
    return %c2_i32, %2, %c0_i32_0, %arg1 : i32, i32, i32, i32
  }
  func.func @transform_5(%arg0: i32, %arg1: i32) -> (i32, i32, i32, i32) {
    %c4_i32 = arith.constant 4 : i32
    %0 = arith.muli %arg0, %c4_i32 : i32
    %c1_i32 = arith.constant 1 : i32
    %1 = arith.subi %0, %c1_i32 : i32
    %c0_i32 = arith.constant 0 : i32
    %2 = arith.maxsi %1, %c0_i32 : i32
    %c3_i32 = arith.constant 3 : i32
    %c0_i32_0 = arith.constant 0 : i32
    %c0_i32_1 = arith.constant 0 : i32
    return %c3_i32, %2, %c0_i32_0, %arg1 : i32, i32, i32, i32
  }
  func.func @transform_6(%arg0: i32, %arg1: i32) -> (i32, i32, i32) {
    %c0_i32 = arith.constant 0 : i32
    %c0_i32_0 = arith.constant 0 : i32
    return %arg0, %c0_i32, %arg1 : i32, i32, i32
  }
}

</mosaic_0001>

<bundles_post_ra>
// kernel: resnet_branch0_map.3
= control target key start
LH: loop header
LB: loop body
LE: loop exit
PB: predicated region body
PF: predicated region fallthrough
CT: control target
= control target key end

     0   :  { %s1018_s21 = smov 0   ;;  %s1020_s22 = smov 0   ;;  %s1141_s0 = inlined_call_operand.vmem [shape: bf16[4,8,8,128], index: 0, kind: input, shape index: {}, may-alias: {0,1,2,3,4,5}]   ;;  %s1142_s1 = inlined_call_operand.vmem [shape: bf16[4,8,8,128], index: 1, kind: input, shape index: {}, may-alias: {0,1,2,3,4,5}]   ;;  %s1143_s2 = inlined_call_operand.vmem [shape: bf16[4,8,8,128], index: 2, kind: input, shape index: {}, may-alias: {0,1,2,3,4,5}]   ;;  %s1144_s3 = inlined_call_operand.vmem [shape: bf16[4,8,8,128], index: 3, kind: input, shape index: {}, may-alias: {0,1,2,3,4,5}]   ;;  %s1145_s4 = inlined_call_operand.vmem [shape: bf16[4,8,8,128], index: 4, kind: input, shape index: {}, may-alias: {0,1,2,3,4,5}]   ;;  %s1146_s5 = inlined_call_operand.vmem [shape: bf16[4,8,8,128], index: 5, kind: input, shape index: {}, may-alias: {0,1,2,3,4,5}]   ;;  %s1147_s6 = inlined_call_operand.vmem [shape: bf16[8,8,128], index: 6, kind: output, shape index: {}]  }
   0x1   :  { %s1022_s23 = smov 0  }
   0x2 LB: > { %s28_s24 = sadd.s32 1, %s977_s22  ;;  %p857_p0 = scmp.ge.s32.totalorder %s981_s23, 1  ;;  %s981_s23 = sphi %s1022_s23, %s16_s23   ;;  %s977_s22 = sphi %s1020_s22, %s1153_s22   ;;  %s973_s21 = sphi %s1018_s21, %s1152_s21  }
   0x3   : > { %p30_p1 = scmp.ge.s32.totalorder %s28_s24, 2  ;;  %p345_p2 = scmp.lt.s32.totalorder %s981_s23, 3 }
   0x5   : > { %s1155_s24 = smov (%p30_p1, %s28_s24), 0  ;;  %p346_p3 = pnand %p857_p0, %p345_p2 }
   0x6   : > { %s858_s25 = sshll.u32 (!%p346_p3), %s973_s21, 2  ;;  %p660_p7 = scmp.eq.s32.totalorder (!%p346_p3), %s973_s21, 0  ;;  %vm577_vm0 = vcmask (!%p346_p3), 1040384   ;;  %vm578_vm1 = vsmask.f32 (!%p346_p3), 256 }
   0x7   : > { %349 = sbr.rel (%p346_p3) target bundleno = 50 (0x32), region = 44  ;;  %p433_p4 = scmp.lt.s32.totalorder (!%p346_p3), %s858_s25, 7  ;;  %vm1085_vm2 = vmand (!%p346_p3), %vm577_vm0, %vm578_vm1 }
   0x8   : > { %s867_s26 = sadd.s32 (!%p346_p3), 4294967295, %s858_s25 }
   0x9   : > { %p473_p5 = scmp.gt.s32.totalorder (!%p346_p3), %s867_s26, 0  ;;  %p868_p6 = scmp.lt.s32.totalorder (!%p346_p3), %s867_s26, 7 }
   0xe   : > { %s1157_s25 = smov (!%p433_p4, %s858_s25), 7  ;;  %s1159_s26 = smov (!%p473_p5, %s867_s26), 0 }
   0xf   : > { %s1039_s27 = sshll.u32 %s1157_s25, 2  ;;  %s1161_s26 = smov (!%p868_p6, %s1159_s26), 7 }
  0x10   : > { %s1046_s30 = scalar_lea.vmem %s1141_s0, %s1039_s27  ;;  %s1052_s9 = scalar_lea.vmem %s1142_s1, %s1039_s27 }
  0x11   : > { %s1058_s12 = scalar_lea.vmem %s1143_s2, %s1039_s27  ;;  %s1064_s15 = scalar_lea.vmem %s1144_s3, %s1039_s27  ;;  %v513_v0 = vld [vmem:[%s1046_s30] sm:$0xf]  ;;  %v514_v2 = vld [vmem:[%s1046_s30 + $0x4] sm:$0xf]  ;;  %v1081_v16 = vld [vmem:[%s1052_s9 + $0x28] sm:$0xf] }
  0x12   : > { %v884_v1 = vld [vmem:[%s1052_s9 + $0x20] sm:$0xf]  ;;  %v885_v3 = vld [vmem:[%s1052_s9 + $0x24] sm:$0xf]  ;;  %s873_s16 = sshll.u32 %s1161_s26, 2  ;;  %v898_v36 = vcombine.low %v1081_v16, %v1081_v16  ;;  %s510_s7 = scalar_lea.vmem %s1147_s6, %s1039_s27 }
  0x13   : > { %v896_v4 = vcombine.low %v884_v1, %v884_v1  ;;  %v888_v5 = vld [vmem:[%s1058_s12 + $0x40] sm:$0xf]  ;;  %v893_v7 = vld [vmem:[%s1064_s15 + $0x64] sm:$0xf]  ;;  %v897_v8 = vcombine.low %v885_v3, %v885_v3  ;;  %s771_s19 = scalar_lea.vmem %s1145_s4, %s873_s16  ;;  %s775_s28 = scalar_lea.vmem %s1146_s5, %s873_s16  ;;  %v529_v17 = vmax.bf16 %v884_v1, %v513_v0  ;;  %v530_v18 = vmax.bf16 %v885_v3, %v514_v2  ;;  %v887_v35 = vld [vmem:[%s1052_s9 + $0x2c] sm:$0xf] }
  0x14   : > { %v892_v6 = vld [vmem:[%s1064_s15 + $0x60] sm:$0xf]  ;;  %v889_v11 = vld [vmem:[%s1058_s12 + $0x44] sm:$0xf]  ;;  %v901_v15 = vcombine.low %v893_v7, %v893_v7  ;;  %s1091_s26 = scalar_select %p660_p7, 1, 0  ;;  %v899_v48 = vcombine.low %v887_v35, %v887_v35 }
  0x15   : > { %v546_v9 = vshrl.u32 %v896_v4, 16  ;;  %v549_v10 = vshll.u32 %v896_v4, 16  ;;  %v553_v12 = vshrl.u32 %v897_v8, 16  ;;  %v556_v13 = vshll.u32 %v897_v8, 16  ;;  %v904_v21 = vld [vmem:[%s771_s19 + $0x40] sm:$0xf] }
  0x16   : > { %v900_v14 = vcombine.low %v892_v6, %v892_v6  ;;  %v588_v20 = vmax.bf16 %v892_v6, %v888_v5  ;;  %v905_v22 = vld [vmem:[%s775_s28 + $0x60] sm:$0xf]  ;;  %v612_v27 = vshrl.u32 %v901_v15, 16  ;;  %v589_v29 = vmax.bf16 %v893_v7, %v889_v11  ;;  %v894_v56 = vld [vmem:[%s1064_s15 + $0x68] sm:$0xf] }
  0x17   : > { %v548_v19 = vrot.slane %v546_v9, 7  ;;  %v555_v23 = vrot.slane %v553_v12, 7  ;;  %v615_v30 = vshll.u32 %v901_v15, 16  ;;  %v906_v31 = vcombine.low %v905_v22, %v905_v22  ;;  %v895_v57 = vld [vmem:[%s1064_s15 + $0x6c] sm:$0xf] }
  0x18   : > { %v605_v25 = vshrl.u32 %v900_v14, 16  ;;  %v608_v26 = vshll.u32 %v900_v14, 16  ;;  %v614_v34 = vrot.slane %v612_v27, 7  ;;  %v646_v38 = vmax.bf16 %v905_v22, %v904_v21  ;;  %v515_v3 = vld [vmem:[%s1046_s30 + $0x8] sm:$0xf] }
  0x19   : > { %v551_v28 = vor.u32 %v549_v10, %v548_v19  ;;  %v558_v32 = vor.u32 %v556_v13, %v555_v23  ;;  %v651_v39 = vshrl.u32 %v906_v31, 16  ;;  %v654_v40 = vshll.u32 %v906_v31, 16  ;;  %v516_v8 = vld [vmem:[%s1046_s30 + $0xc] sm:$0xf]  ;;  %v890_v11 = vld [vmem:[%s1058_s12 + $0x48] sm:$0xf] }
  0x1a   : > { %v607_v33 = vrot.slane %v605_v25, 7  ;;  %v617_v43 = vor.u32 %v615_v30, %v614_v34  ;;  %v662_v44 = vstv %s1091_s26  ;;  %v560_v51 = vshrl.u32 %v898_v36, 16  ;;  %v891_v15 = vld [vmem:[%s1058_s12 + $0x4c] sm:$0xf] }
  0x1b   : > { %v580_v37 = vsel %vm1085_vm2, 0, %v551_v28  ;;  %v581_v41 = vsel %vm1085_vm2, 0, %v558_v32  ;;  %v653_v47 = vrot.slane %v651_v39, 7  ;;  %v563_v52 = vshll.u32 %v898_v36, 16 }
  0x1c   : > { %v610_v42 = vor.u32 %v608_v26, %v607_v33  ;;  %v584_v45 = vmax.bf16 %v580_v37, %v529_v17  ;;  %v585_v46 = vmax.bf16 %v581_v41, %v530_v18  ;;  %v637_v50 = vsel %vm1085_vm2, 0, %v617_v43 }
  0x1d   : > { %v641_v54 = vmax.bf16 %v637_v50, %v589_v29  ;;  %v656_v55 = vor.u32 %v654_v40, %v653_v47  ;;  %v567_v58 = vshrl.u32 %v899_v48, 16  ;;  %vm1107_vm3 = vcmp.eq.s32.totalorder %v662_v44, 1 }
  0x1e   : > { %v636_v49 = vsel %vm1085_vm2, 0, %v610_v42  ;;  %v562_v60 = vrot.slane %v560_v51, 7  ;;  %v570_v61 = vshll.u32 %v899_v48, 16  ;;  %v902_v5 = vcombine.low %v894_v56, %v894_v56 }
  0x1f   : > { %v640_v53 = vmax.bf16 %v636_v49, %v588_v20  ;;  %v658_v62 = vsel %vm1085_vm2, 0, %v656_v55  ;;  %v666_v0 = vmax.bf16 %v641_v54, %v585_v46  ;;  %v569_v1 = vrot.slane %v567_v58, 7 }
  0x20   : > { %v659_v2 = vmax.bf16 %v658_v62, %v646_v38  ;;  %v565_v4 = vor.u32 %v563_v52, %v562_v60  ;;  %v903_v6 = vcombine.low %v895_v57, %v895_v57  ;;  %v619_v12 = vshrl.u32 %v902_v5, 16 }
  0x21   : > { %v665_v63 = vmax.bf16 %v640_v53, %v584_v45  ;;  %v670_v7 = vmax.bf16 %v666_v0, %v640_v53  ;;  %v572_v9 = vor.u32 %v570_v61, %v569_v1  ;;  %v622_v13 = vshll.u32 %v902_v5, 16 }
  0x22   : > { %v664_v10 = vsel %vm1107_vm3, 0, %v659_v2  ;;  %v531_v17 = vmax.bf16 %v1081_v16, %v515_v3  ;;  %v626_v18 = vshrl.u32 %v903_v6, 16  ;;  %v532_v19 = vmax.bf16 %v887_v35, %v516_v8 }
  0x23   : > { %v669_v14 = vmax.bf16 %v665_v63, %v664_v10  ;;  %v582_v20 = vsel %vm1085_vm2, 0, %v565_v4  ;;  %v621_v21 = vrot.slane %v619_v12, 7  ;;  %v629_v22 = vshll.u32 %v903_v6, 16 }
  0x24   : > { %v583_v25 = vsel %vm1085_vm2, 0, %v572_v9  ;;  %v590_v26 = vmax.bf16 %v894_v56, %v890_v11  ;;  %v628_v27 = vrot.slane %v626_v18, 7  ;;  %v591_v28 = vmax.bf16 %v895_v57, %v891_v15 }
  0x25   : > { %v923_v23 = vcombine.low %v669_v14, %v670_v7  ;;  %v624_v29 = vor.u32 %v622_v13, %v621_v21  ;;  %v586_v16 = vmax.bf16 %v582_v20, %v531_v17  ;;  %v587_v31 = vmax.bf16 %v583_v25, %v532_v19 }
  0x26   : > { %v631_v30 = vor.u32 %v629_v22, %v628_v27 }
  0x27   : > { %917 = vst [vmem:[%s510_s7] sm:$0xff] %v923_v23   ;;  %v638_v32 = vsel %vm1085_vm2, 0, %v624_v29 }
  0x28   : > { %v639_v33 = vsel %vm1085_vm2, 0, %v631_v30  ;;  %v642_v34 = vmax.bf16 %v638_v32, %v590_v26 }
  0x29   : > { %v643_v35 = vmax.bf16 %v639_v33, %v591_v28 }
  0x2a   : > { %v667_v36 = vmax.bf16 %v642_v34, %v586_v16 }
  0x2b   : > { %v668_v37 = vmax.bf16 %v643_v35, %v587_v31 }
  0x2c   : > { %v671_v38 = vmax.bf16 %v667_v36, %v641_v54 }
  0x2d   : > { %v672_v39 = vmax.bf16 %v668_v37, %v642_v34 }
  0x2f   : > { %v924_v40 = vcombine.low %v671_v38, %v672_v39 }
  0x31   : > { %925 = vst [vmem:[%s510_s7 + $0x8] sm:$0xff] %v924_v40  }
  0x32 PF: > { %s16_s23 = sadd.s32 1, %s981_s23   ;;  %s1152_s21 = smov %s977_s22 }
  0x33   : > { %p13_p8 = scmp.ge.s32.totalorder %s16_s23, 4   ;;  %s1153_s22 = smov %s1155_s24 }
  0x35   :  { %15 = sbr.rel (!%p13_p8) target bundleno = 2 (0x2), region = 89 }

// kernel: resnet_branch0_map.2
= control target key start
LH: loop header
LB: loop body
LE: loop exit
PB: predicated region body
PF: predicated region fallthrough
CT: control target
= control target key end

     0   :  { %s982_s12 = smov 0   ;;  %s984_s13 = smov 0   ;;  %s1103_s0 = inlined_call_operand.vmem [shape: bf16[4,64,294], index: 0, kind: input, shape index: {}]   ;;  %s1104_s1 = inlined_call_operand.vmem [shape: bf16[294,128], index: 1, kind: input, shape index: {}]   ;;  %s1105_s2 = inlined_call_operand.vmem [shape: f32[1,128], index: 2, kind: input, shape index: {}]   ;;  %s1106_s3 = inlined_call_operand.vmem [shape: bf16[4,64,128], index: 3, kind: output, shape index: {}]  }
   0x1   :  { %s986_s14 = smov 0  }
   0x2 LB: > { %s25_s15 = sadd.s32 1, %s956_s13  ;;  %p734_p0 = scmp.ge.s32.totalorder %s960_s14, 1  ;;  %s960_s14 = sphi %s986_s14, %s13_s14   ;;  %s956_s13 = sphi %s984_s13, %s1108_s13   ;;  %s952_s12 = sphi %s982_s12, %s1107_s12  }
   0x3   : > { %p27_p1 = scmp.ge.s32.totalorder %s25_s15, 4  ;;  %p159_p2 = scmp.lt.s32.totalorder %s960_s14, 5 }
   0x5   : > { %s1110_s15 = smov (%p27_p1, %s25_s15), 0  ;;  %p160_p3 = pnand %p734_p0, %p159_p2 }
   0x6   : > { %v903_v0 = vld [vmem:[%s1104_s1 + $0x40] sm:$0xff] (!%p160_p3)   ;;  %v905_v2 = vld [vmem:[%s1104_s1 + $0x48] sm:$0xff] (!%p160_p3)   ;;  %v907_v4 = vld [vmem:[%s1104_s1 + $0x50] sm:$0xff] (!%p160_p3)   ;;  %p193_p4 = scmp.lt.s32.totalorder (!%p160_p3), %s952_s12, 3  ;;  %vm458_vm0 = vcmask (!%p160_p3), 1042432   ;;  %vm445_vm1 = vcmask (!%p160_p3), 310272  }
   0x7   : > { %163 = sbr.rel (%p160_p3) target bundleno = 289 (0x121), region = 32  ;;  %v904_v1 = vld [vmem:[%s1104_s1] sm:$0xff] (!%p160_p3)   ;;  %816 = vmatprep.subr.bf16.mxu0 (!%p160_p3), %v903_v0  ;;  %v906_v3 = vld [vmem:[%s1104_s1 + $0x8] sm:$0xff] (!%p160_p3)   ;;  %v908_v5 = vld [vmem:[%s1104_s1 + $0x10] sm:$0xff] (!%p160_p3)  }
   0x8   : > { %817 = vmatpush3.bf16.msra.mxu0 (!%p160_p3), %v904_v1  ;;  %v909_v6 = vld [vmem:[%s1104_s1 + $0x58] sm:$0xff] (!%p160_p3)   ;;  %v911_v8 = vld [vmem:[%s1104_s1 + $0x60] sm:$0xff] (!%p160_p3)   ;;  %v913_v11 = vld [vmem:[%s1104_s1 + $0x68] sm:$0xff] (!%p160_p3)  }
   0x9   : > { %818 = vmatprep.subr.bf16.mxu0 (!%p160_p3), %v905_v2  ;;  %v910_v7 = vld [vmem:[%s1104_s1 + $0x18] sm:$0xff] (!%p160_p3)   ;;  %v916_v9 = vld [vmem:[%s1104_s1 + $0x80] sm:$0xff] (!%p160_p3)   ;;  %v919_v12 = vld [vmem:[%s1104_s1 + $0x88] sm:$0xff] (!%p160_p3)  }
   0xa   : > { %v912_v10 = vld [vmem:[%s1104_s1 + $0x20] sm:$0xff] (!%p160_p3)   ;;  %863 = vmatprep.subr.bf16.mxu1 (!%p160_p3), %v916_v9  ;;  %v914_v13 = vld [vmem:[%s1104_s1 + $0x28] sm:$0xff] (!%p160_p3)   ;;  %v915_v14 = vld [vmem:[%s1104_s1 + $0x70] sm:$0xff] (!%p160_p3)  }
   0xb   : > { %864 = vmatpush3.bf16.msra.mxu1 (!%p160_p3), %v916_v9  ;;  %v924_v16 = vld [vmem:[%s1104_s1 + $0x90] ss:$0 sps:$4 sm:$0x77] (!%p160_p3)   ;;  %v918_v21 = vld [vmem:[%s1104_s1 + $0x78] sm:$0xff] (!%p160_p3)   ;;  %v738_v38 = vld [vmem:[%s1105_s2] ss:$0 sm:$0xff] (!%p160_p3) }
   0xc   : > { %819 = vmatpush3.bf16.msra.mxu0 (!%p160_p3), %v906_v3  ;;  %865 = vmatprep.subr.bf16.mxu1 (!%p160_p3), %v919_v12  ;;  %v917_v18 = vld [vmem:[%s1104_s1 + $0x30] sm:$0xff] (!%p160_p3)   ;;  %v460_v19 = vsel (!%p160_p3), %vm458_vm0, %v924_v16, 0  ;;  %v920_v23 = vld [vmem:[%s1104_s1 + $0x38] sm:$0xff] (!%p160_p3)  }
   0xd   : > { %820 = vmatprep.subr.bf16.mxu0 (!%p160_p3), %v907_v4 }
   0xe   : > { %s1112_s12 = smov (!%p193_p4, %s952_s12), 3 }
   0xf   : > { %s878_s7 = smul.u32 96, %s1112_s12  ;;  %866 = vmatpush3.bf16.msra.mxu1 %v919_v12  ;;  %s784_s10 = sshll.u32 %s1112_s12, 5 }
  0x10   : > { %821 = vmatpush3.bf16.msra.mxu0 %v908_v5  ;;  %877 = vmatprep.subr.msk.bf16.mxu1 %vm458_vm0, %v924_v16  ;;  %s1088_s17 = scalar_lea.vmem %s1106_s3, %s784_s10 }
  0x11   : > { %822 = vmatprep.subr.bf16.mxu0 %v909_v6  ;;  %s1045_s22 = scalar_lea.vmem %s1103_s0, %s878_s7 }
  0x12   : > { %v923_v15 = vld [vmem:[%s1045_s22 + $0x4] ss:$12 sps:$4 sm:$0xff]   ;;  %v925_v17 = vld [vmem:[%s1045_s22 + $0x8] ss:$12 sps:$4 sm:$0xff]   ;;  %v926_v20 = vld [vmem:[%s1045_s22 + $0x20] ss:$12 sps:$4 sm:$0xff]  }
  0x13   : > { %494 = vmatprep.mubr.bf16.mxu0 %v923_v15  ;;  %869 = vmatprep.mubr.msk.bf16.mxu1 %vm445_vm1, %v925_v17  ;;  %v933_v22 = vld [vmem:[%s1045_s22 + $0x38] ss:$12 sps:$4 sm:$0xff]   ;;  %v921_v24 = vld [vmem:[%s1045_s22] ss:$12 sps:$4 sm:$0xff]   ;;  %v927_v25 = vld [vmem:[%s1045_s22 + $0x1c] ss:$12 sps:$4 sm:$0xff]  }
  0x14   : > { %823 = vmatpush3.bf16.msra.mxu0 %v910_v7  ;;  %868 = vmatpush3.bf16.msra.mxu1 %v460_v19  ;;  %v934_v26 = vld [vmem:[%s1045_s22 + $0x50] ss:$12 sps:$4 sm:$0xff]   ;;  %v929_v27 = vld [vmem:[%s1045_s22 + $0x18] ss:$12 sps:$4 sm:$0xff]   ;;  %v930_v28 = vld [vmem:[%s1045_s22 + $0x34] ss:$12 sps:$4 sm:$0xff]  }
  0x15   : > { %824 = vmatprep.subr.bf16.mxu0 %v911_v8  ;;  %v932_v29 = vld [vmem:[%s1045_s22 + $0x30] ss:$12 sps:$4 sm:$0xff]   ;;  %v935_v30 = vld [vmem:[%s1045_s22 + $0x4c] ss:$12 sps:$4 sm:$0xff]   ;;  %v937_v31 = vld [vmem:[%s1045_s22 + $0x48] ss:$12 sps:$4 sm:$0xff]  }
  0x17   : > { %870 = vmatmul.mubr.msk.bf16.vlgmr.msra.gmra.mrb[0].mxu1 %vm445_vm1, %v926_v20 }
  0x18   : > { %825 = vmatpush3.bf16.msra.mxu0 %v912_v10  ;;  %873 = vmatprep.mubr.msk.bf16.mxu1 %vm445_vm1, %v933_v22 }
  0x19   : > { %826 = vmatprep.subr.bf16.mxu0 %v913_v11 }
  0x1c   : > { %827 = vmatpush3.bf16.msra.mxu0 %v914_v13 }
  0x1d   : > { %828 = vmatprep.subr.bf16.mxu0 %v915_v14 }
  0x1f   : > { %874 = vmatmul.mubr.msk.bf16.gmra.mrb[4].mxu1 %vm445_vm1, %v934_v26 }
  0x20   : > { %829 = vmatpush3.bf16.msra.mxu0 %v917_v18 }
  0x21   : > { %830 = vmatprep.subr.bf16.mxu0 %v918_v21 }
  0x24   : > { %831 = vmatpush3.bf16.msra.mxu0 %v920_v23 }
  0x27   : > { %495 = vmatmul.mubr.bf16.vlgmr.msra.gmra.mrb[0].mxu0 %v921_v24 }
  0x28   : > { %502 = vmatprep.mubr.bf16.mxu0 %v927_v25 }
  0x2f   : > { %503 = vmatmul.mubr.bf16.gmra.mrb[4].mxu0 %v929_v27 }
  0x30   : > { %510 = vmatprep.mubr.bf16.mxu0 %v930_v28 }
  0x37   : > { %511 = vmatmul.mubr.bf16.gmra.mrb[8].mxu0 %v932_v29 }
  0x38   : > { %518 = vmatprep.mubr.bf16.mxu0 %v935_v30 }
  0x3f   : > { %519 = vmatmul.mubr.bf16.gmra.mrb[12].mxu0 %v937_v31 }
  0xea   : > { %v871_v32 = vpop.f32.mrb[0].mxu1 }
  0xeb   : > { %v561_v33 = vpop.f32.mrb[1].mxu1 }
  0xec   : > { %v872_v34 = vpop.f32.mrb[2].mxu1 }
  0xed   : > { %v564_v35 = vpop.f32.mrb[3].mxu1 }
  0xf2   : > { %v875_v39 = vpop.f32.mrb[4].mxu1 }
  0xf3   : > { %v577_v42 = vpop.f32.mrb[5].mxu1 }
  0xf4   : > { %v876_v44 = vpop.f32.mrb[6].mxu1 }
  0xf5   : > { %v580_v47 = vpop.f32.mrb[7].mxu1 }
  0xfa   : > { %v832_v36 = vpop.f32.mrb[0].mxu0 }
  0xfb   : > { %v833_v37 = vpop.f32.mrb[1].mxu0 }
  0xfc   : > { %v834_v40 = vadd.f32 %v833_v37, %v832_v36  ;;  %v835_v41 = vpop.f32.mrb[2].mxu0 }
  0xfd   : > { %v836_v43 = vpop.f32.mrb[3].mxu0 }
  0xfe   : > { %v837_v45 = vadd.f32 %v836_v43, %v835_v41  ;;  %v497_v46 = vadd.f32 %v834_v40, %v738_v38 }
 0x100   : > { %v562_v48 = vadd.f32 %v561_v33, %v497_v46  ;;  %v500_v49 = vadd.f32 %v837_v45, %v738_v38 }
 0x102   : > { %v565_v50 = vadd.f32 %v564_v35, %v500_v49  ;;  %v838_v51 = vpop.f32.mrb[4].mxu0  ;;  %v592_v53 = vmax.f32 %v562_v48, 0.0 }
 0x103   : > { %v839_v52 = vpop.f32.mrb[5].mxu0 }
 0x104   : > { %v593_v54 = vmax.f32 %v565_v50, 0.0  ;;  %v840_v55 = vadd.f32 %v839_v52, %v838_v51  ;;  %v841_v56 = vpop.f32.mrb[6].mxu0 }
 0x105   : > { %v842_v57 = vpop.f32.mrb[7].mxu0 }
 0x106   : > { %v796_v58 = vpack.c.bf16 %v593_v54, %v592_v53  ;;  %v505_v59 = vadd.f32 %v840_v55, %v738_v38  ;;  %v843_v60 = vadd.f32 %v842_v57, %v841_v56 }
 0x108   : > { %797 = vst [vmem:[%s1088_s17] sm:$0xff] %v796_v58   ;;  %v570_v61 = vadd.f32 %v871_v32, %v505_v59  ;;  %v508_v62 = vadd.f32 %v843_v60, %v738_v38 }
 0x10a   : > { %v573_v63 = vadd.f32 %v872_v34, %v508_v62  ;;  %v844_v0 = vpop.f32.mrb[8].mxu0  ;;  %v594_v2 = vmax.f32 %v570_v61, 0.0 }
 0x10b   : > { %v845_v1 = vpop.f32.mrb[9].mxu0 }
 0x10c   : > { %v595_v3 = vmax.f32 %v573_v63, 0.0  ;;  %v846_v4 = vadd.f32 %v845_v1, %v844_v0  ;;  %v847_v5 = vpop.f32.mrb[10].mxu0 }
 0x10d   : > { %v848_v6 = vpop.f32.mrb[11].mxu0 }
 0x10e   : > { %v801_v7 = vpack.c.bf16 %v595_v3, %v594_v2  ;;  %v849_v8 = vadd.f32 %v848_v6, %v847_v5  ;;  %v513_v9 = vadd.f32 %v846_v4, %v738_v38 }
 0x110   : > { %813 = vst [vmem:[%s1088_s17 + $0x8] sm:$0xff] %v801_v7   ;;  %v578_v10 = vadd.f32 %v577_v42, %v513_v9  ;;  %v516_v11 = vadd.f32 %v849_v8, %v738_v38 }
 0x112   : > { %v581_v12 = vadd.f32 %v580_v47, %v516_v11  ;;  %v850_v13 = vpop.f32.mrb[12].mxu0  ;;  %v596_v15 = vmax.f32 %v578_v10, 0.0 }
 0x113   : > { %v851_v14 = vpop.f32.mrb[13].mxu0 }
 0x114   : > { %v597_v16 = vmax.f32 %v581_v12, 0.0  ;;  %v852_v17 = vadd.f32 %v851_v14, %v850_v13  ;;  %v853_v18 = vpop.f32.mrb[14].mxu0 }
 0x115   : > { %v854_v19 = vpop.f32.mrb[15].mxu0 }
 0x116   : > { %v806_v20 = vpack.c.bf16 %v597_v16, %v596_v15  ;;  %v521_v21 = vadd.f32 %v852_v17, %v738_v38  ;;  %v855_v22 = vadd.f32 %v854_v19, %v853_v18 }
 0x118   : > { %814 = vst [vmem:[%s1088_s17 + $0x10] sm:$0xff] %v806_v20   ;;  %v586_v23 = vadd.f32 %v875_v39, %v521_v21  ;;  %v524_v24 = vadd.f32 %v855_v22, %v738_v38 }
 0x11a   : > { %v589_v25 = vadd.f32 %v876_v44, %v524_v24  ;;  %v598_v26 = vmax.f32 %v586_v23, 0.0 }
 0x11c   : > { %v599_v27 = vmax.f32 %v589_v25, 0.0 }
 0x11e   : > { %v811_v28 = vpack.c.bf16 %v599_v27, %v598_v26 }
 0x120   : > { %815 = vst [vmem:[%s1088_s17 + $0x18] sm:$0xff] %v811_v28  }
 0x121 PF: > { %s13_s14 = sadd.s32 1, %s960_s14   ;;  %s1107_s12 = smov %s956_s13 }
 0x122   : > { %p10_p5 = scmp.ge.s32.totalorder %s13_s14, 6   ;;  %s1108_s13 = smov %s1110_s15 }
 0x124   :  { %12 = sbr.rel (!%p10_p5) target bundleno = 2 (0x2), region = 62 }

</bundles_post_ra>
